<compile_context>
chip_gen: v7x
topology: tpu7x:2x2x1
jax: 0.10.0
libtpu: 0.0.40
codegen_flags: <defaults>
</compile_context>

<pallas_src>
import math

import jax
import jax.numpy as jnp
from jax import lax
from jax.experimental import pallas as pl
from jax.experimental.pallas import tpu as pltpu


# ---------------------------------------------------------------------------
# Tile-size helpers (respect the (8, 128) block constraints).
# ---------------------------------------------------------------------------
def _pick_tile(dim, cap, aligns=(128,)):
    """Largest tile <= cap that divides `dim` and is a multiple of one of
    `aligns` (tried in order); falls back to the full dimension, which is
    always a legal block."""
    if dim <= cap:
        return dim
    for align in aligns:
        best = None
        t = align
        while t <= cap:
            if dim % t == 0:
                best = t
            t += align
        if best is not None:
            return best
    # TODO(synk): for long non-divisible sequences, pad + mask instead of a
    # whole-axis fallback block (can exceed VMEM for extreme lengths).
    return dim


def _pick_head_group(num_heads, d_v):
    """Smallest head group whose column width is a multiple of 128 lanes;
    otherwise take all heads (full d_model block, also legal & lane-dense)."""
    for hg in range(1, num_heads + 1):
        if num_heads % hg == 0 and (hg * d_v) % 128 == 0:
            return hg
    return num_heads


# ---------------------------------------------------------------------------
# Kernel 1: tiled dense projection  y = x @ W_t + b
#   grid = (M/tm, N/tn, K/tk), f32 accumulator, bf16 MXU operands.
#   Weights arrive already in bf16 (pre-cast at init) — no per-block w cast.
# ---------------------------------------------------------------------------
def _linear_kernel(x_ref, w_ref, b_ref, o_ref, acc_ref):
    kk = pl.program_id(2)

    @pl.when(kk == 0)
    def _init():
        acc_ref[...] = jnp.zeros(acc_ref.shape, jnp.float32)

    acc_ref[...] += jnp.dot(
        x_ref[...].astype(jnp.bfloat16),      # no-op when x is already bf16
        w_ref[...],                            # bf16 weights straight off HBM
        preferred_element_type=jnp.float32,
    )

    @pl.when(kk == pl.num_programs(2) - 1)
    def _finalize():
        o_ref[...] = (acc_ref[...] + b_ref[...]).astype(o_ref.dtype)


def linear(x, w_t, b, out_dtype=None):
    """x: (M, K), w_t: (K, N) (pre-transposed, bf16), b: (N,) f32 -> (M, N)."""
    M, K = x.shape
    N = w_t.shape[1]
    if out_dtype is None:
        out_dtype = x.dtype
    tm = _pick_tile(M, 512, aligns=(16, 8))
    tn = _pick_tile(N, 512, aligns=(128,))
    tk = _pick_tile(K, 512, aligns=(128,))
    grid = (M // tm, N // tn, K // tk)

    return pl.pallas_call(
        _linear_kernel,
        out_shape=jax.ShapeDtypeStruct((M, N), out_dtype),
        grid_spec=pltpu.PrefetchScalarGridSpec(
            num_scalar_prefetch=0,
            grid=grid,
            in_specs=[
                pl.BlockSpec((tm, tk), lambda i, j, k: (i, k)),
                pl.BlockSpec((tk, tn), lambda i, j, k: (k, j)),
                pl.BlockSpec((1, tn), lambda i, j, k: (0, j)),
            ],
            out_specs=pl.BlockSpec((tm, tn), lambda i, j, k: (i, j)),
            scratch_shapes=[pltpu.VMEM((tm, tn), jnp.float32)],
        ),
        compiler_params=pltpu.CompilerParams(
            dimension_semantics=("parallel", "parallel", "arbitrary"),
            vmem_limit_bytes=48 * 1024 * 1024,
        ),
    )(x, w_t, b.reshape(1, N))


# ---------------------------------------------------------------------------
# Kernel 2: flash-style attention on (B, S, d_model)-layout bf16 projections.
#   grid = (B, head_groups, Sq/tq, Sk/tkv); KV axis is the online-softmax
#   reduction ("arbitrary"); m/l/acc live in f32 VMEM scratch.
#   Masked positions are filled with 1e-9 (reference-module semantics).
#   `col_offsets` (in columns) lets q/k/v live inside one packed QKV array.
# ---------------------------------------------------------------------------
def flash_attention(qp, kp, vp, mask_i8, num_heads, d_v, col_offsets=(0, 0, 0)):
    B, Sq, _ = qp.shape
    Sk = kp.shape[1]
    d_model = num_heads * d_v

    HG = _pick_head_group(num_heads, d_v)   # heads per grid step
    HGD = HG * d_v                          # lane-dense column width
    G = num_heads // HG
    q_off, k_off, v_off = (c // HGD for c in col_offsets)  # block-index offsets

    # Large tiles: attention here is memory-bound, bigger blocks amortize the
    # ~0.35us/step overhead.  tq prefers 32-row alignment (int8 mask packs 32
    # sublanes/vreg); tkv stays a 128 multiple (lane dim of the score tile).
    tq = _pick_tile(Sq, 512, aligns=(32, 16, 8))
    tkv = _pick_tile(Sk, 2048, aligns=(128,))

    # Keep the double-buffered working set within a conservative budget so the
    # same tiling is safe on v7x (64 MiB physical VMEM/TC) and v5e/v6e.
    def _vmem_bytes(tq_, tkv_):
        q_b = 2 * tq_ * HGD * 2                # bf16 q block, double-buffered
        kv_b = 2 * 2 * tkv_ * HGD * 2          # bf16 k + v blocks
        m_b = 2 * tq_ * tkv_                   # int8 mask block
        o_b = 2 * tq_ * HGD * 2                # bf16 output block
        scr = HG * tq_ * (d_v + 2) * 4         # f32 m/l/acc scratch
        return q_b + kv_b + m_b + o_b + scr

    budget = 40 * 1024 * 1024
    while _vmem_bytes(tq, tkv) > budget and tkv % 256 == 0 and tkv > 128:
        tkv //= 2
    while _vmem_bytes(tq, tkv) > budget and tq % 64 == 0 and tq > 32:
        tq //= 2

    grid = (B, G, Sq // tq, Sk // tkv)

    def kernel(q_ref, k_ref, v_ref, m_ref, o_ref, m_sc, l_sc, acc_sc):
        ik = pl.program_id(3)

        @pl.when(ik == 0)
        def _init():
            m_sc[...] = jnp.full(m_sc.shape, -jnp.inf, jnp.float32)
            l_sc[...] = jnp.zeros(l_sc.shape, jnp.float32)
            acc_sc[...] = jnp.zeros(acc_sc.shape, jnp.float32)

        masked = m_ref[...] != 0                 # (tq, tkv) bool
        q_blk = q_ref[...]                       # (tq, HGD)  bf16, pre-scaled
        k_blk = k_ref[...]                       # (tkv, HGD) bf16
        v_blk = v_ref[...]                       # (tkv, HGD) bf16

        # Static unroll over the heads of this group.  NOTE: per-head slices
        # are d_v wide; when d_v < 128 they split the lane tile — kept because
        # head split/merge never touches HBM and the group stays lane-dense.
        for h in range(HG):
            lo = h * d_v
            hi = lo + d_v
            # q @ k^T via dot_general on the last dims -> no transpose of k.
            # 1/sqrt(d_v) was folded into W_q/b_q at init.
            s = lax.dot_general(
                q_blk[:, lo:hi], k_blk[:, lo:hi],
                (((1,), (1,)), ((), ())),
                preferred_element_type=jnp.float32,
            )                                    # (tq, tkv) f32
            # Reference module fills masked scores with 1e-9 (NOT -inf).
            s = jnp.where(masked, jnp.float32(1e-9), s)

            m_prev = m_sc[h]                     # (tq, 1)
            m_new = jnp.maximum(m_prev, jnp.max(s, axis=-1, keepdims=True))
            alpha = jnp.exp(m_prev - m_new)
            p = jnp.exp(s - m_new)               # f32 softmax math (all gens)
            l_sc[h] = alpha * l_sc[h] + jnp.sum(p, axis=-1, keepdims=True)
            pv = lax.dot_general(
                p.astype(jnp.bfloat16), v_blk[:, lo:hi],
                (((1,), (0,)), ((), ())),
                preferred_element_type=jnp.float32,
            )                                    # (tq, d_v)
            acc_sc[h] = alpha * acc_sc[h] + pv
            m_sc[h] = m_new

        @pl.when(ik == pl.num_programs(3) - 1)
        def _finalize():
            # TODO(synk): dropout on the attention probabilities is identity
            # here (inference / eval mode).
            parts = []
            for h in range(HG):
                inv_l = pl.reciprocal(l_sc[h], approx=True)   # EUP slot
                parts.append(acc_sc[h] * inv_l)
            # Single lane-dense (tq, HGD) store instead of HG narrow stores.
            o_ref[...] = jnp.concatenate(parts, axis=-1).astype(o_ref.dtype)

    if mask_i8.ndim == 2:
        # One (Sq, Sk) mask shared across batch & heads: no per-batch stream.
        mask_spec = pl.BlockSpec((tq, tkv), lambda b, g, iq, ik: (iq, ik))
    else:
        mask_spec = pl.BlockSpec((None, tq, tkv),
                                 lambda b, g, iq, ik: (b, iq, ik))

    # TODO(synk): on v5e consider pipeline_mode=pl.Buffered(3) for k/v specs
    # if DMA is still exposed after the larger tiles.
    in_specs = [
        pl.BlockSpec((None, tq, HGD), lambda b, g, iq, ik: (b, iq, g + q_off)),
        pl.BlockSpec((None, tkv, HGD), lambda b, g, iq, ik: (b, ik, g + k_off)),
        pl.BlockSpec((None, tkv, HGD), lambda b, g, iq, ik: (b, ik, g + v_off)),
        mask_spec,
    ]

    return pl.pallas_call(
        kernel,
        out_shape=jax.ShapeDtypeStruct((B, Sq, d_model), jnp.bfloat16),
        grid_spec=pltpu.PrefetchScalarGridSpec(
            num_scalar_prefetch=0,
            grid=grid,
            in_specs=in_specs,
            out_specs=pl.BlockSpec((None, tq, HGD),
                                   lambda b, g, iq, ik: (b, iq, g)),
            scratch_shapes=[
                pltpu.VMEM((HG, tq, 1), jnp.float32),    # running max
                pltpu.VMEM((HG, tq, 1), jnp.float32),    # running sum
                pltpu.VMEM((HG, tq, d_v), jnp.float32),  # running output
            ],
        ),
        compiler_params=pltpu.CompilerParams(
            dimension_semantics=("parallel", "parallel", "parallel",
                                 "arbitrary"),
            vmem_limit_bytes=48 * 1024 * 1024,
        ),
    )(qp, kp, vp, mask_i8)


# ---------------------------------------------------------------------------
# Module wrapper (plain JAX glue: parameter handling only, no HBM permutes).
# ---------------------------------------------------------------------------
def init_mha_params(key, d_model, num_heads):
    d_v = d_model // num_heads
    scale = 1.0 / math.sqrt(d_v)
    bound = 1.0 / math.sqrt(d_model)
    keys = jax.random.split(key, 8)
    raw = {}
    for i, name in enumerate(["q", "k", "v", "o"]):
        w = jax.random.uniform(
            keys[2 * i], (d_model, d_model), jnp.float32, -bound, bound
        )
        b = jax.random.uniform(
            keys[2 * i + 1], (d_model,), jnp.float32, -bound, bound
        )
        raw[name] = (w, b)

    params = {}
    # Fold 1/sqrt(d_v) into the q projection (zero-cost at init).
    wq, bq = raw["q"]
    params["Wq_t"] = (wq * scale).T.astype(jnp.bfloat16)   # stored (in, out)
    params["b_q"] = bq * scale
    for name in ["k", "v", "o"]:
        w, b = raw[name]
        params[f"W{name}_t"] = w.T.astype(jnp.bfloat16)
        params[f"b_{name}"] = b
    # Fused QKV weight/bias for the self-attention path (q is k is v).
    params["Wqkv_t"] = jnp.concatenate(
        [params["Wq_t"], params["Wk_t"], params["Wv_t"]], axis=1
    )
    params["b_qkv"] = jnp.concatenate(
        [params["b_q"], params["b_k"], params["b_v"]]
    )
    return params


def multihead_attention(params, q, k, v, mask_bool, num_heads):
    B, Sq, d_model = q.shape
    d_v = d_model // num_heads
    mask_i8 = mask_bool.astype(jnp.int8)       # compact mask stream

    def proj(x, w_t, b):
        # Keep (B, S, *) layout; head h == columns [h*d_v, (h+1)*d_v).
        y = linear(x.reshape(-1, x.shape[-1]), w_t, b, out_dtype=jnp.bfloat16)
        return y.reshape(x.shape[0], x.shape[1], -1)

    if q is k and k is v:
        # Fused QKV: read the activations once, one matmul kernel launch.
        qkv = proj(q, params["Wqkv_t"], params["b_qkv"])   # (B, S, 3*d_model)
        HGD = _pick_head_group(num_heads, d_v) * d_v
        if HGD % 128 == 0:
            # Consume the packed array in place via column offsets (no split).
            ctx = flash_attention(qkv, qkv, qkv, mask_i8, num_heads, d_v,
                                  col_offsets=(0, d_model, 2 * d_model))
        else:
            qp, kp, vp = jnp.split(qkv, 3, axis=-1)
            ctx = flash_attention(qp, kp, vp, mask_i8, num_heads, d_v)
    else:
        qp = proj(q, params["Wq_t"], params["b_q"])
        kp = proj(k, params["Wk_t"], params["b_k"])
        vp = proj(v, params["Wv_t"], params["b_v"])
        ctx = flash_attention(qp, kp, vp, mask_i8, num_heads, d_v)

    out = linear(ctx.reshape(B * Sq, d_model), params["Wo_t"], params["b_o"],
                 out_dtype=jnp.float32)
    return out.reshape(B, Sq, d_model)


if __name__ == "__main__":
    B, S, d_model, num_heads = 2, 8, 32, 4

    key = jax.random.PRNGKey(0)
    kparam, kq, kk, kv = jax.random.split(key, 4)
    params = init_mha_params(kparam, d_model, num_heads)

    q = jax.random.normal(kq, (B, S, d_model), jnp.float32)
    k = jax.random.normal(kk, (B, S, d_model), jnp.float32)
    v = jax.random.normal(kv, (B, S, d_model), jnp.float32)
    # Causal-style boolean mask shared across batch & heads (True = masked).
    mask = jnp.triu(jnp.ones((S, S), dtype=bool), k=1)

    # Cross-attention path (separate q/k/v projections).
    out = multihead_attention(params, q, k, v, mask, num_heads)
    jax.block_until_ready(out)
    assert out.shape == (B, S, d_model)
    assert out.dtype == jnp.float32

    # Self-attention path (fused QKV projection).
    out_self = multihead_attention(params, q, q, q, mask, num_heads)
    jax.block_until_ready(out_self)
    assert out_self.shape == (B, S, d_model)
    assert out_self.dtype == jnp.float32

    print("KERNEL_OK")
</pallas_src>

<mosaic_0001>
module attributes {stable_mosaic.version = 11 : i64} {
  func.func @_linear_kernel(%arg0: i32, %arg1: i32, %arg2: i32, %arg3: memref<16x32xf32, #tpu.memory_space<vmem>>, %arg4: memref<32x32xbf16, #tpu.memory_space<vmem>>, %arg5: memref<1x32xf32, #tpu.memory_space<vmem>>, %arg6: memref<16x32xbf16, #tpu.memory_space<vmem>>, %arg7: memref<16x32xf32, #tpu.memory_space<vmem>>) attributes {dimension_semantics = [#tpu.dimension_semantics<parallel>, #tpu.dimension_semantics<parallel>, #tpu.dimension_semantics<arbitrary>], iteration_bounds = array<i64: 1, 1, 1>, scalar_prefetch = 0 : i64, scratch_operands = 1 : i64, tpu.core_type = #tpu.core_type<tc>, window_params = [{transform_indices = @transform_0, window_bounds = array<i64: 16, 32>}, {transform_indices = @transform_1, window_bounds = array<i64: 32, 32>}, {transform_indices = @transform_2, window_bounds = array<i64: 1, 32>}, {transform_indices = @transform_3, window_bounds = array<i64: 16, 32>}]} {
    %c0_i32 = arith.constant 0 : i32
    %0 = arith.cmpi eq, %arg2, %c0_i32 : i32
    %1 = arith.extui %0 : i1 to i32
    %c0_i32_0 = arith.constant 0 : i32
    %2 = arith.cmpi ne, %1, %c0_i32_0 : i32
    scf.if %2 {
      %cst_10 = arith.constant 0.000000e+00 : f32
      %13 = vector.broadcast %cst_10 : f32 to vector<16x32xf32>
      %c0_11 = arith.constant 0 : index
      %c0_12 = arith.constant 0 : index
      %14 = vector.load %arg7[%c0_11, %c0_12] : memref<16x32xf32, #tpu.memory_space<vmem>>, vector<16x32xf32>
      tpu.vector_store %arg7[%c0_11, %c0_12], %13 {strides = array<i32>} : memref<16x32xf32, #tpu.memory_space<vmem>>, vector<16x32xf32>,
    } else {
    }
    %c0 = arith.constant 0 : index
    %c0_1 = arith.constant 0 : index
    %3 = vector.load %arg7[%c0, %c0_1] : memref<16x32xf32, #tpu.memory_space<vmem>>, vector<16x32xf32>
    %c0_2 = arith.constant 0 : index
    %c0_3 = arith.constant 0 : index
    %4 = vector.load %arg3[%c0_2, %c0_3] : memref<16x32xf32, #tpu.memory_space<vmem>>, vector<16x32xf32>
    %5 = arith.truncf %4 : vector<16x32xf32> to vector<16x32xbf16>
    %c0_4 = arith.constant 0 : index
    %c0_5 = arith.constant 0 : index
    %6 = vector.load %arg4[%c0_4, %c0_5] : memref<32x32xbf16, #tpu.memory_space<vmem>>, vector<32x32xbf16>
    %cst = arith.constant dense<0.000000e+00> : vector<16x32xf32>
    %7 = tpu.matmul %5, %6, %cst {dimension_numbers = #tpu.dot_dimension_numbers<[1], [0], [0], [1], [0, 0, 1, 1], [], []>} : vector<16x32xbf16>, vector<32x32xbf16>, vector<16x32xf32> -> vector<16x32xf32>
    %8 = arith.addf %3, %7 : vector<16x32xf32>
    %c0_6 = arith.constant 0 : index
    %c0_7 = arith.constant 0 : index
    %9 = vector.load %arg7[%c0_6, %c0_7] : memref<16x32xf32, #tpu.memory_space<vmem>>, vector<16x32xf32>
    tpu.vector_store %arg7[%c0_6, %c0_7], %8 {strides = array<i32>} : memref<16x32xf32, #tpu.memory_space<vmem>>, vector<16x32xf32>,
    %c0_i32_8 = arith.constant 0 : i32
    %10 = arith.cmpi eq, %arg2, %c0_i32_8 : i32
    %11 = arith.extui %10 : i1 to i32
    %c0_i32_9 = arith.constant 0 : i32
    %12 = arith.cmpi ne, %11, %c0_i32_9 : i32
    scf.if %12 {
      %c0_10 = arith.constant 0 : index
      %c0_11 = arith.constant 0 : index
      %13 = vector.load %arg7[%c0_10, %c0_11] : memref<16x32xf32, #tpu.memory_space<vmem>>, vector<16x32xf32>
      %c0_12 = arith.constant 0 : index
      %c0_13 = arith.constant 0 : index
      %14 = vector.load %arg5[%c0_12, %c0_13] : memref<1x32xf32, #tpu.memory_space<vmem>>, vector<1x32xf32>
      %15 = vector.broadcast %14 : vector<1x32xf32> to vector<16x32xf32>
      %16 = arith.addf %13, %15 : vector<16x32xf32>
      %17 = arith.truncf %16 : vector<16x32xf32> to vector<16x32xbf16>
      %c0_14 = arith.constant 0 : index
      %c0_15 = arith.constant 0 : index
      %18 = vector.load %arg6[%c0_14, %c0_15] : memref<16x32xbf16, #tpu.memory_space<vmem>>, vector<16x32xbf16>
      tpu.vector_store %arg6[%c0_14, %c0_15], %17 {strides = array<i32>} : memref<16x32xbf16, #tpu.memory_space<vmem>>, vector<16x32xbf16>,
    } else {
    }
    return
  }
  func.func @transform_0(%arg0: i32, %arg1: i32, %arg2: i32) -> (i32, i32) {
    %c0_i32 = arith.constant 0 : i32
    return %arg0, %arg2 : i32, i32
  }
  func.func @transform_1(%arg0: i32, %arg1: i32, %arg2: i32) -> (i32, i32) {
    %c0_i32 = arith.constant 0 : i32
    return %arg2, %arg1 : i32, i32
  }
  func.func @transform_2(%arg0: i32, %arg1: i32, %arg2: i32) -> (i32, i32) {
    %c0_i32 = arith.constant 0 : i32
    %c0_i32_0 = arith.constant 0 : i32
    return %c0_i32, %arg1 : i32, i32
  }
  func.func @transform_3(%arg0: i32, %arg1: i32, %arg2: i32) -> (i32, i32) {
    %c0_i32 = arith.constant 0 : i32
    return %arg0, %arg1 : i32, i32
  }
}

</mosaic_0001>

<bundles_post_ra>
// kernel: tpu_custom_call.1
= control target key start
LH: loop header
LB: loop body
LE: loop exit
PB: predicated region body
PF: predicated region fallthrough
CT: control target
= control target key end

     0   :  { %8 = vsyncpa [#allocation4], 0  ;;  %s345_s0 = inlined_call_operand.hbm [shape: f32[16,32], index: 0, kind: input, shape index: {}]   ;;  %s346_s1 = inlined_call_operand.hbm [shape: bf16[32,32], index: 1, kind: input, shape index: {}]   ;;  %s347_s2 = inlined_call_operand.vmem [shape: f32[1,32], index: 2, kind: input, shape index: {}]   ;;  %s348_s3 = inlined_call_operand.hbm [shape: bf16[16,32], index: 3, kind: output, shape index: {}]  }
   0x1   :  { %9 = vsyncpa [#allocation7], 0 }
   0x2   :  { %10 = vsyncpa [#allocation5], 0  ;;  %s266_s12 = smov [#allocation3]   ;;  %s194_s16 = scalar_lea.hbm %s345_s0, 256 }
   0x3   :  { %s16_s13 = sshll.u32 %s266_s12, 4  ;;  %p195_p0 = scmp.ne.s32.totalorder %s345_s0, %s194_s16  ;;  %s17_s13 = int_to_ptr.vmem [resolvable:$true] %s16_s13 }
   0x4   :  { %p198_p1 = scmp.lt.u32.totalorder %s194_s16, %s345_s0 }
   0x6   :  { %p200_p2 = pnand %p198_p1, %p195_p0 }
   0x8   :  { %203 = shalt.err (!%p200_p2)
}
   0x9   :  { %s204_s21 = scalar_lea.vmem %s17_s13, 256  ;;  %p209_p4 = scmp.lt.s32.totalorder %s17_s13, %s17_s13 }
   0xa   :  { %p205_p3 = scmp.ne.s32.totalorder %s17_s13, %s204_s21  ;;  %p210_p5 = scmp.lt.s32.totalorder %s204_s21, %s204_s21 }
   0xc   :  { %p211_p6 = por %p210_p5, %p209_p4 }
   0xe   :  { %p212_p7 = pnand %p211_p6, %p205_p3 }
  0x10   :  { %215 = shalt.err (!%p212_p7)
}
  0x11   :  { %s267_s22 = smov 128   ;;  %s268_s23 = smov 8  }
  0x12   :  { %22 = dma.hbm_to_vmem [thread:$0]  %s345_s0, 256, %s17_s13, [#allocation4], %s267_s22, %s267_s22, %s268_s23  }
  0x13   :  { %s269_s26 = smov [#allocation6]   ;;  %s216_s30 = scalar_lea.hbm %s346_s1, 256 }
  0x14   :  { %s28_s27 = sshll.u32 %s269_s26, 4  ;;  %p217_p8 = scmp.ne.s32.totalorder %s346_s1, %s216_s30  ;;  %s29_s27 = int_to_ptr.vmem [resolvable:$true] %s28_s27 }
  0x15   :  { %p220_p9 = scmp.lt.u32.totalorder %s216_s30, %s346_s1 }
  0x17   :  { %p222_p10 = pnand %p220_p9, %p217_p8 }
  0x19   :  { %225 = shalt.err (!%p222_p10)
}
  0x1a   :  { %s226_s8 = scalar_lea.vmem %s29_s27, 256  ;;  %p231_p12 = scmp.lt.s32.totalorder %s29_s27, %s29_s27 }
  0x1b   :  { %p227_p11 = scmp.ne.s32.totalorder %s29_s27, %s226_s8  ;;  %p232_p13 = scmp.lt.s32.totalorder %s226_s8, %s226_s8 }
  0x1d   :  { %p233_p0 = por %p232_p13, %p231_p12 }
  0x1f   :  { %p234_p1 = pnand %p233_p0, %p227_p11 }
  0x21   :  { %237 = shalt.err (!%p234_p1)
}
  0x22   :  { %s270_s0 = smov 64   ;;  %s271_s9 = smov 4  }
  0x23   :  { %34 = dma.hbm_to_vmem [thread:$0]  %s346_s1, 256, %s29_s27, [#allocation7], %s270_s0, %s270_s0, %s271_s9  }
  0x24   :  { %260 = dma.done.wait [#allocation4], 256  }
  0x25   :  { %261 = vsyncadd [#allocation4], 4294967040 }
  0x26   :  { %262 = dma.done.wait [#allocation7], 256  }
  0x27   :  { %263 = vsyncadd [#allocation7], 4294967040  ;;  %vm48_vm0 = vcmask 261120   ;;  %v272_v0 = vmov 0.0   ;;  %vm273_vm1 = vmmov 0   ;;  %v192_v1 = vld [vmem:[#allocation6] sm:$0xff]  }
  0x28   :  { %175 = vmatprep.subr.bf16.mxu0 %v272_v0  ;;  %179 = vmatprep.mubr.msk.bf16.mxu0 %vm273_vm1, %v272_v0  ;;  %49 = vst.msk [vmem:[#allocation2] sm:$0xff] %vm48_vm0, %v272_v0  ;;  %50 = vst.msk [vmem:[#allocation2 + $0x8] sm:$0xff] %vm48_vm0, %v272_v0  ;;  %v193_v2 = vld [vmem:[#allocation6 + $0x8] sm:$0xff]   ;;  %v53_v3 = vld [vmem:[#allocation3] sm:$0xff]  ;;  %vm143_vm2 = vcmask 257024   ;;  %s274_s13 = smov [#allocation8]  }
  0x29   :  { %176 = vmatpush3.bf16.msra.mxu0 %v192_v1  ;;  %v54_v4 = vld [vmem:[#allocation3 + $0x8] sm:$0xff]  ;;  %v167_v14 = vld [vmem:[%s347_s2] ss:$0 sm:$0xff]  ;;  %s151_s14 = sshll.u32 %s274_s13, 4  ;;  %s152_s14 = int_to_ptr.vmem [resolvable:$true] %s151_s14 }
  0x2a   :  { %177 = vmatprep.subr.bf16.mxu0 %v272_v0  ;;  %v55_v5 = vpack.c.bf16 %v54_v4, %v53_v3  ;;  %s238_s15 = scalar_lea.vmem %s152_s14, 128  ;;  %p243_p3 = scmp.lt.s32.totalorder %s152_s14, %s152_s14 }
  0x2b   :  { %p239_p2 = scmp.ne.s32.totalorder %s152_s14, %s238_s15  ;;  %p244_p4 = scmp.lt.s32.totalorder %s238_s15, %s238_s15 }
  0x2d   :  { %178 = vmatpush3.bf16.msra.mxu0 %v193_v2  ;;  %p245_p5 = por %p244_p4, %p243_p3 }
  0x2f   :  { %v51_v6 = vld [vmem:[#allocation2] sm:$0xff]  ;;  %v52_v8 = vld [vmem:[#allocation2 + $0x8] sm:$0xff]  ;;  %p246_p6 = pnand %p245_p5, %p239_p2 }
  0x30   :  { %180 = vmatmul.mubr.msk.bf16.vlgmr.msra.gmra.mrb[0].mxu0 %vm48_vm0, %v55_v5 }
 0x103   :  { %v110_v7 = vpop.f32.mrb[0].mxu0 }
 0x104   :  { %v117_v9 = vadd.f32 %v110_v7, %v51_v6  ;;  %v181_v10 = vpop.f32.mrb[1].mxu0 }
 0x105   :  { %v113_v11 = vpop.f32.mrb[2].mxu0 }
 0x106   :  { %119 = vst.msk [vmem:[#allocation2] sm:$0xff] %vm48_vm0, %v117_v9  ;;  %v118_v12 = vadd.f32 %v113_v11, %v52_v8  ;;  %v182_v13 = vpop.f32.mrb[3].mxu0 }
 0x108   :  { %120 = vst.msk [vmem:[#allocation2 + $0x8] sm:$0xff] %vm48_vm0, %v118_v12 }
 0x10d   :  { %v124_v15 = vld [vmem:[#allocation2] sm:$0xff] }
 0x10e   :  { %v133_v16 = vadd.f32 %v167_v14, %v124_v15 }
 0x10f   :  { %v125_v17 = vld [vmem:[#allocation2 + $0x8] sm:$0xff] }
 0x110   :  { %v134_v18 = vadd.f32 %v167_v14, %v125_v17  ;;  %v170_v19 = vpack.c.bf16 %v133_v16, %v133_v16 }
 0x112   :  { %v171_v20 = vpack.c.bf16 %v134_v18, %v134_v18  ;;  %144 = vst.msk [vmem:[#allocation8] sm:$0xf] %vm143_vm2, %v170_v19 }
 0x114   :  { %145 = vst.msk [vmem:[#allocation8 + $0x4] sm:$0xf] %vm143_vm2, %v171_v20 }
 0x115   :  { %249 = shalt.err (!%p246_p6)
}
 0x116   :  { %s250_s17 = scalar_lea.hbm %s348_s3, 128 }
 0x117   :  { %p251_p7 = scmp.ne.s32.totalorder %s348_s3, %s250_s17  ;;  %p254_p8 = scmp.lt.u32.totalorder %s250_s17, %s348_s3 }
 0x119   :  { %p256_p9 = pnand %p254_p8, %p251_p7 }
 0x11b   :  { %259 = shalt.err (!%p256_p9)
}
 0x11c   :  { %157 = dma.vmem_to_hbm [thread:$0]  %s152_s14, 128, %s348_s3, [#allocation5], %s270_s0, %s270_s0, %s271_s9  }
 0x11d   :  { %264 = dma.done.wait [#allocation5], 128  }
 0x11e   :  { %265 = vsyncadd [#allocation5], 4294967168 }
 0x11f   :  { %161 = vsyncpa [#allocation4], 1 }
 0x120   :  { %162 = vsyncpa [#allocation7], 1 }
 0x121   :  { %163 = vsyncpa [#allocation5], 1 }

</bundles_post_ra>
